<compile_context>
chip_gen: v7x
topology: tpu7x:2x2x1
jax: 0.10.0
libtpu: 0.0.40
codegen_flags: <defaults>
</compile_context>

<pallas_src>
import jax
import jax.numpy as jnp
from jax.experimental import pallas as pl
from jax.experimental.pallas import tpu as pltpu

_LANE = 128


def _round_up(x, m):
    return ((x + m - 1) // m) * m


def _num_tensorcores():
    # v7x has 2 TensorCores per chip; v5e/v6e have 1.  Best-effort detection:
    # on failure assume 1 and skip the even-grid heuristic (harmless).
    try:
        kind = jax.devices()[0].device_kind.lower()
        if "v7" in kind or "tpu7" in kind:
            return 2
    except Exception:
        pass
    return 1


def _pick_tile(batch, tile_b, num_tc):
    # Lane-dense output tile => multiple of 128; never larger than the batch
    # needs (rounded up to a lane).
    t = max(_LANE, _round_up(min(tile_b, batch), _LANE))
    if num_tc > 1 and batch > 2 * num_tc * _LANE:
        # v7x only: dimension_semantics=('parallel',) shards the grid across
        # both TensorCores -- aim for an even grid with >=2 tiles per core.
        n = -(-batch // t)
        target = max(2 * num_tc, _round_up(n, num_tc))
        if n < target:
            t = max(_LANE, _round_up(-(-batch // target), _LANE))
    return t


def ffnn_kernel(x_ref, w1_ref, b1_ref, w2t_ref, b2t_ref, o_ref):
    # x arrives in its native dtype; cast to the MXU compute dtype on the
    # (idle) VPU so the wrapper never makes an extra HBM pass over x.
    xb = x_ref[...].astype(w1_ref.dtype)

    # First linear (MXU, f32 accumulation) + bias + ReLU in f32.
    h = jnp.dot(xb, w1_ref[...], preferred_element_type=jnp.float32)
    h = jnp.maximum(h + b1_ref[...], 0.0)

    # Dropout: identity (eval-mode semantics).
    # TODO(synk): training-mode dropout (p=0.3, scale 1/0.7) would need
    #             pltpu.prng_seed + pltpu.stateful_bernoulli.

    # Second linear, computed transposed so the output tile is (O_pad, t):
    #   logits_t[c, b] = sum_k W2[k, c] * h[b, k]
    # Trailing-dim contraction is the TPU-friendly matmul form.
    logits_t = jnp.einsum(
        "ck,bk->cb", w2t_ref[...], h.astype(w2t_ref.dtype),
        preferred_element_type=jnp.float32)
    # Padded class rows come out of the bias-add already at -1e30 (no iota/where).
    logits_t = logits_t + b2t_ref[...]

    # Numerically stable log-softmax over the (sublane) class axis.
    m = jnp.max(logits_t, axis=0, keepdims=True)
    lse = jnp.log(jnp.sum(jnp.exp(logits_t - m), axis=0, keepdims=True)) + m
    o_ref[...] = (logits_t - lse).astype(o_ref.dtype)   # lane-dense (8, t) store


def ffnn_forward(x, w1, b1, w2, b2, *, tile_b=8192, compute_dtype=jnp.bfloat16,
                 return_transposed=False):
    B, D = x.shape
    H = w1.shape[1]
    O = w2.shape[1]
    O_pad = _round_up(max(O, 8), 8)          # class axis lives on sublanes now

    num_tc = _num_tensorcores()
    t = _pick_tile(B, tile_b, num_tc)
    grid_n = pl.cdiv(B, t)
    B_out = grid_n * t                        # padded output columns (<= one tile extra)

    # Tiny resident operands: cast/pad once in the wrapper (a few KiB, negligible).
    w1c = w1.astype(compute_dtype)                                        # (D, H)
    b1c = b1.reshape(1, H).astype(jnp.float32)                            # (1, H)
    w2t = jnp.pad(w2.T, ((0, O_pad - O), (0, 0))).astype(compute_dtype)   # (O_pad, H)
    b2t = jnp.pad(b2.reshape(O, 1).astype(jnp.float32),
                  ((0, O_pad - O), (0, 0)), constant_values=-1e30)        # (O_pad, 1)

    cost = pl.CostEstimate(
        flops=2 * B * (D * H + H * O_pad),
        transcendentals=B * (O_pad + 1),
        bytes_accessed=(x.size * x.dtype.itemsize        # x read
                        + O_pad * B_out * 4              # packed output write
                        + w1c.size * 2 + w2t.size * 2 + (H + O_pad) * 4),
    )

    out_t = pl.pallas_call(
        ffnn_kernel,
        out_shape=jax.ShapeDtypeStruct((O_pad, B_out), jnp.float32),
        grid=(grid_n,),
        in_specs=[
            pl.BlockSpec((t, D), lambda i: (i, 0)),       # x tile, streamed, native dtype
            pl.BlockSpec((D, H), lambda i: (0, 0)),       # W1 (resident)
            pl.BlockSpec((1, H), lambda i: (0, 0)),       # b1 (resident)
            pl.BlockSpec((O_pad, H), lambda i: (0, 0)),   # W2^T (resident, zero-pad rows)
            pl.BlockSpec((O_pad, 1), lambda i: (0, 0)),   # b2 col (resident, -1e30 pad rows)
        ],
        out_specs=pl.BlockSpec((O_pad, t), lambda i: (0, i)),  # lane-dense packed out
        compiler_params=pltpu.CompilerParams(
            dimension_semantics=("parallel",),
            vmem_limit_bytes=32 * 1024 * 1024,
        ),
        cost_estimate=cost,
    )(x, w1c, b1c, w2t, b2t)

    if return_transposed:
        # Raw (O_pad, B_out) log-prob layout; real data at [:O, :B].  Consumers
        # (e.g. NLL-loss gathers) can read this directly and skip the slice/T.
        return out_t
    # Small fix-up pass over the compact (8, B_out) array only (~32 B/row).
    return out_t[:O, :B].T


def reference_forward(x, w1, b1, w2, b2, compute_dtype=jnp.bfloat16):
    # Pure-JAX reference replicating the kernel's bf16 quantization of the
    # matmul inputs (accumulation + elementwise stay f32).
    f32 = jnp.float32
    xc = x.astype(compute_dtype).astype(f32)
    w1c = w1.astype(compute_dtype).astype(f32)
    w2c = w2.astype(compute_dtype).astype(f32)
    h = jnp.maximum(xc @ w1c + b1.reshape(1, -1), 0.0)
    h = h.astype(compute_dtype).astype(f32)
    logits = h @ w2c + b2.reshape(1, -1)
    return jax.nn.log_softmax(logits, axis=-1)


if __name__ == "__main__":
    # Shapes consistent with the module: input_dim=32, h=16, output_dim=5.
    # B=24 exercises the ragged-tile path (no batch padding in the wrapper).
    B, D, H, O = 24, 32, 16, 5

    key = jax.random.PRNGKey(0)
    kx, kw1, kb1, kw2, kb2 = jax.random.split(key, 5)

    # Deterministic PyTorch-style Linear init: U(-1/sqrt(fan_in), 1/sqrt(fan_in)).
    bound1 = 1.0 / (D ** 0.5)
    bound2 = 1.0 / (H ** 0.5)
    x = jax.random.normal(kx, (B, D), dtype=jnp.float32)
    w1 = jax.random.uniform(kw1, (D, H), minval=-bound1, maxval=bound1, dtype=jnp.float32)
    b1 = jax.random.uniform(kb1, (H,), minval=-bound1, maxval=bound1, dtype=jnp.float32)
    w2 = jax.random.uniform(kw2, (H, O), minval=-bound2, maxval=bound2, dtype=jnp.float32)
    b2 = jax.random.uniform(kb2, (O,), minval=-bound2, maxval=bound2, dtype=jnp.float32)

    out = ffnn_forward(x, w1, b1, w2, b2)
    out = jax.block_until_ready(out)

    ref = reference_forward(x, w1, b1, w2, b2)
    assert out.shape == (B, O)
    assert jnp.allclose(out, ref, atol=2e-4, rtol=2e-4), "mismatch vs reference"

    print("KERNEL_OK")
</pallas_src>

<mosaic_0001>
module attributes {stable_mosaic.version = 11 : i64} {
  func.func @ffnn_kernel(%arg0: i32, %arg1: memref<128x32xf32, #tpu.memory_space<vmem>>, %arg2: memref<32x16xbf16, #tpu.memory_space<vmem>>, %arg3: memref<1x16xf32, #tpu.memory_space<vmem>>, %arg4: memref<8x16xbf16, #tpu.memory_space<vmem>>, %arg5: memref<8x1xf32, #tpu.memory_space<vmem>>, %arg6: memref<8x128xf32, #tpu.memory_space<vmem>>) attributes {dimension_semantics = [#tpu.dimension_semantics<parallel>], iteration_bounds = array<i64: 1>, scalar_prefetch = 0 : i64, scratch_operands = 0 : i64, tpu.core_type = #tpu.core_type<tc>, window_params = [{transform_indices = @transform_0, window_bounds = array<i64: 128, 32>}, {pipeline_mode = #tpu.pipeline_mode<synchronous>, transform_indices = @transform_1, window_bounds = array<i64: 32, 16>}, {pipeline_mode = #tpu.pipeline_mode<synchronous>, transform_indices = @transform_2, window_bounds = array<i64: 1, 16>}, {pipeline_mode = #tpu.pipeline_mode<synchronous>, transform_indices = @transform_3, window_bounds = array<i64: 8, 16>}, {pipeline_mode = #tpu.pipeline_mode<synchronous>, transform_indices = @transform_4, window_bounds = array<i64: 8, 1>}, {transform_indices = @transform_5, window_bounds = array<i64: 8, 128>}]} {
    %c0 = arith.constant 0 : index
    %c0_0 = arith.constant 0 : index
    %0 = vector.load %arg1[%c0, %c0_0] : memref<128x32xf32, #tpu.memory_space<vmem>>, vector<128x32xf32>
    %1 = arith.truncf %0 : vector<128x32xf32> to vector<128x32xbf16>
    %c0_1 = arith.constant 0 : index
    %c0_2 = arith.constant 0 : index
    %2 = vector.load %arg2[%c0_1, %c0_2] : memref<32x16xbf16, #tpu.memory_space<vmem>>, vector<32x16xbf16>
    %cst = arith.constant dense<0.000000e+00> : vector<128x16xf32>
    %3 = tpu.matmul %1, %2, %cst {dimension_numbers = #tpu.dot_dimension_numbers<[1], [0], [0], [1], [0, 0, 1, 1], [], []>} : vector<128x32xbf16>, vector<32x16xbf16>, vector<128x16xf32> -> vector<128x16xf32>
    %c0_3 = arith.constant 0 : index
    %c0_4 = arith.constant 0 : index
    %4 = vector.load %arg3[%c0_3, %c0_4] : memref<1x16xf32, #tpu.memory_space<vmem>>, vector<1x16xf32>
    %5 = vector.broadcast %4 : vector<1x16xf32> to vector<128x16xf32>
    %6 = arith.addf %3, %5 : vector<128x16xf32>
    %cst_5 = arith.constant 0.000000e+00 : f32
    %7 = vector.broadcast %cst_5 : f32 to vector<128x16xf32>
    %8 = arith.maximumf %6, %7 : vector<128x16xf32>
    %c0_6 = arith.constant 0 : index
    %c0_7 = arith.constant 0 : index
    %9 = vector.load %arg4[%c0_6, %c0_7] : memref<8x16xbf16, #tpu.memory_space<vmem>>, vector<8x16xbf16>
    %10 = arith.truncf %8 : vector<128x16xf32> to vector<128x16xbf16>
    "tpu.trace_start"() <{level = 10 : i32, message = "ck,bk->cb"}> : () -> ()
    %cst_8 = arith.constant dense<0.000000e+00> : vector<8x128xf32>
    %11 = tpu.matmul %9, %10, %cst_8 {dimension_numbers = #tpu.dot_dimension_numbers<[1], [1], [0], [0], [0, 0, 1, 0], [], []>} : vector<8x16xbf16>, vector<128x16xbf16>, vector<8x128xf32> -> vector<8x128xf32>
    "tpu.trace_stop"() : () -> ()
    %c0_9 = arith.constant 0 : index
    %c0_10 = arith.constant 0 : index
    %12 = vector.load %arg5[%c0_9, %c0_10] : memref<8x1xf32, #tpu.memory_space<vmem>>, vector<8x1xf32>
    %13 = vector.broadcast %12 : vector<8x1xf32> to vector<8x128xf32>
    %14 = arith.addf %11, %13 : vector<8x128xf32>
    %cst_11 = arith.constant dense<0xFF800000> : vector<128xf32>
    %15 = vector.multi_reduction <maximumf>, %14, %cst_11 [0] : vector<8x128xf32> to vector<128xf32>
    %16 = vector.shape_cast %15 : vector<128xf32> to vector<1x128xf32>
    %17 = vector.broadcast %16 : vector<1x128xf32> to vector<8x128xf32>
    %18 = arith.subf %14, %17 : vector<8x128xf32>
    %19 = math.exp %18 : vector<8x128xf32>
    %cst_12 = arith.constant dense<0.000000e+00> : vector<128xf32>
    %20 = vector.multi_reduction <add>, %19, %cst_12 [0] : vector<8x128xf32> to vector<128xf32>
    %21 = vector.shape_cast %20 : vector<128xf32> to vector<1x128xf32>
    %22 = math.log %21 : vector<1x128xf32>
    %23 = arith.addf %22, %16 : vector<1x128xf32>
    %24 = vector.broadcast %23 : vector<1x128xf32> to vector<8x128xf32>
    %25 = arith.subf %14, %24 : vector<8x128xf32>
    %c0_13 = arith.constant 0 : index
    %c0_14 = arith.constant 0 : index
    %26 = vector.load %arg6[%c0_13, %c0_14] : memref<8x128xf32, #tpu.memory_space<vmem>>, vector<8x128xf32>
    tpu.vector_store %arg6[%c0_13, %c0_14], %25 {strides = array<i32>} : memref<8x128xf32, #tpu.memory_space<vmem>>, vector<8x128xf32>,
    return
  }
  func.func @transform_0(%arg0: i32) -> (i32, i32) {
    %c0_i32 = arith.constant 0 : i32
    %c0_i32_0 = arith.constant 0 : i32
    return %arg0, %c0_i32 : i32, i32
  }
  func.func @transform_1(%arg0: i32) -> (i32, i32) {
    %c0_i32 = arith.constant 0 : i32
    %c0_i32_0 = arith.constant 0 : i32
    %c0_i32_1 = arith.constant 0 : i32
    return %c0_i32, %c0_i32_0 : i32, i32
  }
  func.func @transform_2(%arg0: i32) -> (i32, i32) {
    %c0_i32 = arith.constant 0 : i32
    %c0_i32_0 = arith.constant 0 : i32
    %c0_i32_1 = arith.constant 0 : i32
    return %c0_i32, %c0_i32_0 : i32, i32
  }
  func.func @transform_3(%arg0: i32) -> (i32, i32) {
    %c0_i32 = arith.constant 0 : i32
    %c0_i32_0 = arith.constant 0 : i32
    %c0_i32_1 = arith.constant 0 : i32
    return %c0_i32, %c0_i32_0 : i32, i32
  }
  func.func @transform_4(%arg0: i32) -> (i32, i32) {
    %c0_i32 = arith.constant 0 : i32
    %c0_i32_0 = arith.constant 0 : i32
    %c0_i32_1 = arith.constant 0 : i32
    return %c0_i32, %c0_i32_0 : i32, i32
  }
  func.func @transform_5(%arg0: i32) -> (i32, i32) {
    %c0_i32 = arith.constant 0 : i32
    %c0_i32_0 = arith.constant 0 : i32
    return %c0_i32, %arg0 : i32, i32
  }
}

</mosaic_0001>

<bundles_post_ra>
// kernel: tpu_custom_call.1
= control target key start
LH: loop header
LB: loop body
LE: loop exit
PB: predicated region body
PF: predicated region fallthrough
CT: control target
= control target key end

     0   :  { %vm69_vm0 = vcmask 261120   ;;  %s565_s0 = inlined_call_operand.vmem [shape: f32[24,32], index: 0, kind: input, shape index: {}]   ;;  %s566_s1 = inlined_call_operand.vmem [shape: bf16[32,16], index: 1, kind: input, shape index: {}]   ;;  %s567_s2 = inlined_call_operand.vmem [shape: f32[1,16], index: 2, kind: input, shape index: {}]   ;;  %s568_s3 = inlined_call_operand.vmem [shape: bf16[8,16], index: 3, kind: input, shape index: {}]   ;;  %s569_s4 = inlined_call_operand.vmem [shape: f32[8,1], index: 4, kind: input, shape index: {}]   ;;  %s570_s5 = inlined_call_operand.hbm [shape: f32[8,128], index: 5, kind: output, shape index: {}]  }
   0x1   :  { %v400_v0 = vld [vmem:[%s566_s1] sm:$0xff]   ;;  %v401_v1 = vld [vmem:[%s566_s1 + $0x8] sm:$0xff]   ;;  %v24_v5 = vld [vmem:[%s565_s0 + $0x10] sm:$0xff] }
   0x2   :  { %355 = vmatprep.subr.bf16.mxu0 %v400_v0  ;;  %v22_v2 = vld [vmem:[%s565_s0] sm:$0xff]  ;;  %v23_v3 = vld [vmem:[%s565_s0 + $0x8] sm:$0xff]  ;;  %v25_v6 = vld [vmem:[%s565_s0 + $0x18] sm:$0xff] }
   0x3   :  { %356 = vmatpush3.bf16.msra.mxu0 %v400_v0  ;;  %v38_v4 = vpack.c.bf16 %v23_v3, %v22_v2  ;;  %v26_v7 = vld [vmem:[%s565_s0 + $0x20] sm:$0xff]  ;;  %v27_v8 = vld [vmem:[%s565_s0 + $0x28] sm:$0xff]  ;;  %v39_v9 = vpack.c.bf16 %v25_v6, %v24_v5 }
   0x4   :  { %357 = vmatprep.subr.bf16.mxu0 %v401_v1  ;;  %v40_v10 = vpack.c.bf16 %v27_v8, %v26_v7 }
   0x5   :  { %359 = vmatprep.mubr.msk.bf16.mxu0 %vm69_vm0, %v38_v4 }
   0x7   :  { %358 = vmatpush3.bf16.msra.mxu0 %v401_v1 }
   0x8   :  { %10 = vsyncpa [#allocation3], 0  ;;  %v28_v11 = vld [vmem:[%s565_s0 + $0x30] sm:$0xff]  ;;  %v29_v12 = vld [vmem:[%s565_s0 + $0x38] sm:$0xff]  ;;  %v430_v26 = vmov 0.0   ;;  %vm431_vm1 = vmmov 0  }
   0x9   :  { %v30_v13 = vld [vmem:[%s565_s0 + $0x40] sm:$0xff]  ;;  %v31_v14 = vld [vmem:[%s565_s0 + $0x48] sm:$0xff]  ;;  %v41_v15 = vpack.c.bf16 %v29_v12, %v28_v11  ;;  %v32_v17 = vld [vmem:[%s565_s0 + $0x50] sm:$0xff]  ;;  %375 = vmatprep.subr.bf16.mxu1 %v430_v26  ;;  %391 = vmatprep.mubr.msk.bf16.mxu1 %vm431_vm1, %v430_v26  ;;  %v432_v28 = vmov 0   ;;  %vm222_vm2 = vcmask 130048  }
   0xa   :  { %360 = vmatmul.mubr.msk.bf16.vlgmr.msra.gmra.mrb[0].mxu0 %vm69_vm0, %v39_v9  ;;  %v42_v16 = vpack.c.bf16 %v31_v14, %v30_v13  ;;  %v33_v18 = vld [vmem:[%s565_s0 + $0x58] sm:$0xff]  ;;  %v34_v19 = vld [vmem:[%s565_s0 + $0x60] sm:$0xff]  ;;  %v35_v20 = vld [vmem:[%s565_s0 + $0x68] sm:$0xff]  ;;  %399 = vset.pattern.permute.xlu0 %v432_v28 }
   0xb   :  { %363 = vmatprep.mubr.msk.bf16.mxu0 %vm69_vm0, %v40_v10  ;;  %v43_v21 = vpack.c.bf16 %v33_v18, %v32_v17  ;;  %v44_v22 = vpack.c.bf16 %v35_v20, %v34_v19  ;;  %v36_v23 = vld [vmem:[%s565_s0 + $0x70] sm:$0xff]  ;;  %v37_v24 = vld [vmem:[%s565_s0 + $0x78] sm:$0xff]  ;;  %v216_v27 = vld [vmem:[%s569_s4] sm:$0xff] }
   0xc   :  { %v45_v25 = vpack.c.bf16 %v37_v24, %v36_v23  ;;  %219 = vperm.xlu0 %399, %v216_v27   ;;  %v324_v29 = vld [vmem:[%s567_s2] ss:$0 sm:$0xff] }
  0x12   :  { %364 = vmatmul.mubr.msk.bf16.gmra.mrb[4].mxu0 %vm69_vm0, %v41_v15 }
  0x13   :  { %367 = vmatprep.mubr.msk.bf16.mxu0 %vm69_vm0, %v42_v16 }
  0x1a   :  { %368 = vmatmul.mubr.msk.bf16.gmra.mrb[8].mxu0 %vm69_vm0, %v43_v21 }
  0x1b   :  { %371 = vmatprep.mubr.msk.bf16.mxu0 %vm69_vm0, %v44_v22 }
  0x22   :  { %372 = vmatmul.mubr.msk.bf16.gmra.mrb[12].mxu0 %vm69_vm0, %v45_v25 }
  0xdd   :  { %v361_v30 = vpop.f32.mrb[0].mxu0 }
  0xde   :  { %v137_v31 = vadd.f32 %v361_v30, %v324_v29  ;;  %v128_v32 = vpop.f32.mrb[1].mxu0 }
  0xdf   :  { %v129_v33 = vadd.f32 %v324_v29, %v128_v32  ;;  %v362_v34 = vpop.f32.mrb[2].mxu0  ;;  %v220_v32 = vpop.permute.xlu0 %219 }
  0xe0   :  { %v140_v35 = vadd.f32 %v362_v34, %v324_v29  ;;  %v131_v36 = vpop.f32.mrb[3].mxu0  ;;  %v193_v38 = vmax.f32 %v137_v31, 0.0  ;;  %v207_v31 = vld [vmem:[%s568_s3] sm:$0xf]  ;;  %s433_s3 = smov [#allocation2]  }
  0xe1   :  { %v132_v37 = vadd.f32 %v324_v29, %v131_v36  ;;  %v191_v40 = vmax.f32 %v129_v33, 0.0  ;;  %s316_s4 = sshll.u32 %s433_s3, 4  ;;  %s317_s4 = int_to_ptr.vmem [resolvable:$true] %s316_s4 }
  0xe2   :  { %v194_v39 = vmax.f32 %v140_v35, 0.0  ;;  %s406_s6 = scalar_lea.vmem %s317_s4, 128  ;;  %p411_p1 = scmp.lt.s32.totalorder %s317_s4, %s317_s4 }
  0xe3   :  { %v192_v41 = vmax.f32 %v132_v37, 0.0  ;;  %p407_p0 = scmp.ne.s32.totalorder %s317_s4, %s406_s6  ;;  %p412_p2 = scmp.lt.s32.totalorder %s406_s6, %s406_s6 }
  0xe4   :  { %v209_v42 = vpack.c.bf16 %v194_v39, %v193_v38 }
  0xe5   :  { %v208_v43 = vpack.c.bf16 %v192_v41, %v191_v40  ;;  %v365_v44 = vpop.f32.mrb[4].mxu0  ;;  %p413_p3 = por %p412_p2, %p411_p1 }
  0xe6   :  { %v153_v45 = vadd.f32 %v365_v44, %v324_v29  ;;  %v144_v46 = vpop.f32.mrb[5].mxu0  ;;  %v230_v62 = vsel %vm222_vm2, %v209_v42, 0 }
  0xe7   :  { %v227_v47 = vsel %vm222_vm2, %v208_v43, 0  ;;  %v145_v48 = vadd.f32 %v324_v29, %v144_v46  ;;  %v366_v49 = vpop.f32.mrb[6].mxu0  ;;  %p414_p4 = pnand %p413_p3, %p407_p0 }
  0xe8   :  { %376 = vmatpush3.bf16.xpose.msra.mxu1 %v227_v47  ;;  %v197_v50 = vmax.f32 %v153_v45, 0.0  ;;  %v156_v51 = vadd.f32 %v366_v49, %v324_v29  ;;  %v147_v52 = vpop.f32.mrb[7].mxu0 }
  0xe9   :  { %v195_v53 = vmax.f32 %v145_v48, 0.0  ;;  %v148_v54 = vadd.f32 %v324_v29, %v147_v52  ;;  %377 = vmatprep.subr.bf16.mxu1 %v430_v26 }
  0xea   :  { %v198_v55 = vmax.f32 %v156_v51, 0.0 }
  0xeb   :  { %v196_v56 = vmax.f32 %v148_v54, 0.0 }
  0xec   :  { %v211_v57 = vpack.c.bf16 %v198_v55, %v197_v50 }
  0xed   :  { %v210_v58 = vpack.c.bf16 %v196_v56, %v195_v53  ;;  %v369_v59 = vpop.f32.mrb[8].mxu0 }
  0xee   :  { %v169_v60 = vadd.f32 %v369_v59, %v324_v29  ;;  %v160_v61 = vpop.f32.mrb[9].mxu0  ;;  %v236_v25 = vsel %vm222_vm2, %v211_v57, 0 }
  0xef   :  { %v161_v63 = vadd.f32 %v324_v29, %v160_v61  ;;  %v370_v0 = vpop.f32.mrb[10].mxu0  ;;  %v233_v13 = vsel %vm222_vm2, %v210_v58, 0 }
  0xf0   :  { %378 = vmatpush3.bf16.xpose.msra.mxu1 %v230_v62  ;;  %v201_v1 = vmax.f32 %v169_v60, 0.0  ;;  %v172_v2 = vadd.f32 %v370_v0, %v324_v29  ;;  %v163_v3 = vpop.f32.mrb[11].mxu0 }
  0xf1   :  { %379 = vmatprep.subr.bf16.mxu1 %v430_v26  ;;  %v199_v4 = vmax.f32 %v161_v63, 0.0  ;;  %v164_v5 = vadd.f32 %v324_v29, %v163_v3 }
  0xf2   :  { %v202_v6 = vmax.f32 %v172_v2, 0.0 }
  0xf3   :  { %v200_v7 = vmax.f32 %v164_v5, 0.0 }
  0xf4   :  { %v213_v8 = vpack.c.bf16 %v202_v6, %v201_v1 }
  0xf5   :  { %v212_v9 = vpack.c.bf16 %v200_v7, %v199_v4  ;;  %v373_v10 = vpop.f32.mrb[12].mxu0 }
  0xf6   :  { %v185_v11 = vadd.f32 %v373_v10, %v324_v29  ;;  %v176_v12 = vpop.f32.mrb[13].mxu0  ;;  %v242_v28 = vsel %vm222_vm2, %v213_v8, 0 }
  0xf7   :  { %v177_v14 = vadd.f32 %v324_v29, %v176_v12  ;;  %v374_v15 = vpop.f32.mrb[14].mxu0  ;;  %v239_v27 = vsel %vm222_vm2, %v212_v9, 0 }
  0xf8   :  { %380 = vmatpush3.bf16.xpose.msra.mxu1 %v233_v13  ;;  %v205_v16 = vmax.f32 %v185_v11, 0.0  ;;  %v188_v17 = vadd.f32 %v374_v15, %v324_v29  ;;  %v179_v18 = vpop.f32.mrb[15].mxu0 }
  0xf9   :  { %381 = vmatprep.subr.bf16.mxu1 %v430_v26  ;;  %v203_v19 = vmax.f32 %v177_v14, 0.0  ;;  %v180_v20 = vadd.f32 %v324_v29, %v179_v18 }
  0xfa   :  { %v206_v21 = vmax.f32 %v188_v17, 0.0 }
  0xfb   :  { %v204_v22 = vmax.f32 %v180_v20, 0.0 }
  0xfc   :  { %v215_v23 = vpack.c.bf16 %v206_v21, %v205_v16 }
  0xfd   :  { %v214_v24 = vpack.c.bf16 %v204_v22, %v203_v19 }
  0xfe   :  { %v248_v30 = vsel %vm222_vm2, %v215_v23, 0 }
  0xff   :  { %v245_v29 = vsel %vm222_vm2, %v214_v24, 0 }
 0x100   :  { %382 = vmatpush3.bf16.xpose.msra.mxu1 %v236_v25 }
 0x101   :  { %383 = vmatprep.subr.bf16.mxu1 %v430_v26 }
 0x108   :  { %384 = vmatpush3.bf16.xpose.msra.mxu1 %v239_v27 }
 0x109   :  { %385 = vmatprep.subr.bf16.mxu1 %v430_v26 }
 0x110   :  { %386 = vmatpush3.bf16.xpose.msra.mxu1 %v242_v28 }
 0x111   :  { %387 = vmatprep.subr.bf16.mxu1 %v430_v26 }
 0x118   :  { %388 = vmatpush3.bf16.xpose.msra.mxu1 %v245_v29 }
 0x119   :  { %389 = vmatprep.subr.bf16.mxu1 %v430_v26 }
 0x120   :  { %390 = vmatpush3.bf16.xpose.msra.mxu1 %v248_v30 }
 0x127   :  { %392 = vmatmul.mubr.msk.bf16.vlgmr.msra.gmra.mrb[0].mxu1 %vm222_vm2, %v207_v31 }
 0x1fa   :  { %v284_v33 = vpop.f32.mrb[0].mxu1 }
 0x1fb   :  { %v285_v34 = vadd.f32 %v284_v33, %v220_v32  ;;  %v393_v35 = vpop.f32.mrb[1].mxu1 }
 0x1fc   :  { %v287_v36 = vpop.f32.mrb[2].mxu1 }
 0x1fd   :  { %v290_v37 = vrot.slane %v285_v34, 4  ;;  %v394_v38 = vpop.f32.mrb[3].mxu1 }
 0x1ff   :  { %v291_v39 = vmax.f32 %v285_v34, %v290_v37 }
 0x201   :  { %v292_v40 = vrot.slane %v291_v39, 2 }
 0x203   :  { %v293_v41 = vmax.f32 %v291_v39, %v292_v40 }
 0x205   :  { %v294_v26 = vrot.slane %v293_v41, 1 }
 0x207   :  { %v295_v42 = vmax.f32 %v293_v41, %v294_v26 }
 0x209   :  { %v296_v43 = vsub.f32 %v285_v34, %v295_v42 }
 0x20b   :  { %v297_v44 = vmul.f32 1.442695, %v296_v43 }
 0x20d   :  { %402 = vpow2.f32 %v297_v44 }
 0x217   :  { %v403_v45 = vpop.eup %402 }
 0x218   :  { %v299_v46 = vrot.slane %v403_v45, 4 }
 0x21a   :  { %v300_v47 = vadd.f32 %v403_v45, %v299_v46 }
 0x21c   :  { %v301_v48 = vrot.slane %v300_v47, 2 }
 0x21e   :  { %v302_v49 = vadd.f32 %v301_v48, %v300_v47 }
 0x220   :  { %v303_v50 = vrot.slane %v302_v49, 1 }
 0x222   :  { %v304_v51 = vadd.f32 %v303_v50, %v302_v49 }
 0x224   :  { %404 = vlog2.f32 %v304_v51 }
 0x22e   :  { %v405_v52 = vpop.eup %404 }
 0x22f   :  { %v306_v53 = vmul.f32 0.6931472, %v405_v52 }
 0x231   :  { %v307_v54 = vadd.f32 %v306_v53, %v295_v42 }
 0x233   :  { %v308_v55 = vsub.f32 %v285_v34, %v307_v54 }
 0x235   :  { %309 = vst [vmem:[#allocation2] sm:$0xff] %v308_v55 }
 0x236   :  { %417 = shalt.err (!%p414_p4)
}
 0x237   :  { %s418_s9 = scalar_lea.hbm %s570_s5, 128 }
 0x238   :  { %p419_p5 = scmp.ne.s32.totalorder %s570_s5, %s418_s9  ;;  %p422_p6 = scmp.lt.u32.totalorder %s418_s9, %s570_s5 }
 0x23a   :  { %p424_p7 = pnand %p422_p6, %p419_p5 }
 0x23c   :  { %427 = shalt.err (!%p424_p7)
}
 0x23d   :  { %319 = dma.vmem_to_hbm [thread:$0]  %s317_s4, 128, %s570_s5, [#allocation3]  }
 0x23e   :  { %428 = dma.done.wait [#allocation3], 128  }
 0x23f   :  { %429 = vsyncadd [#allocation3], 4294967168 }
 0x240   :  { %323 = vsyncpa [#allocation3], 1 }

</bundles_post_ra>
